<compile_context>
chip_gen: v7x
topology: tpu7x:2x2x1
jax: 0.10.0
libtpu: 0.0.40
codegen_flags: <defaults>
</compile_context>

<pallas_src>
import jax
import jax.numpy as jnp
from jax.experimental import pallas as pl
from jax.experimental.pallas import tpu as pltpu


def _lr_kernel(w_ref, x_ref, o_ref):
    # w_ref: (2,) float32 scalars in SMEM.
    # x_ref: (2, bn) VMEM tile, batch on the lane (last) axis.
    # o_ref: (1, bn) VMEM tile, lane-dense output -> unmasked full-lane stores.
    w0 = w_ref[0]
    w1 = w_ref[1]
    # Pure VPU: 2 broadcast-muls + 1 add. No MXU push/pop latency.
    o_ref[...] = (w0 * x_ref[0:1, :] + w1 * x_ref[1:2, :]).astype(o_ref.dtype)


def lr_forward(x, w, *, block_n=1024):
    """Pallas equivalent of LR.forward: returns X @ W (X: (n, 2), W: (2, 1))."""
    n, k = x.shape
    assert k == 2 and w.shape == (k, 1)

    # Wrapper-side layout plumbing: batch on the lane axis.
    xt = x.T                  # (2, n)
    w_flat = w.reshape(-1)    # (2,) -> SMEM scalars

    # Tile the batch (lane) axis only when it is 128-lane aligned; otherwise a
    # single full-array block (full-extent blocks are always legal).
    if n % 128 == 0:
        bn = min(block_n, n)
    else:
        bn = n
    grid = (pl.cdiv(n, bn),)

    out = pl.pallas_call(
        _lr_kernel,
        out_shape=jax.ShapeDtypeStruct((1, n), x.dtype),
        grid=grid,
        in_specs=[
            # Tiny weight vector lives in SMEM as scalars (no VMEM tile/DMA).
            pl.BlockSpec(memory_space=pltpu.MemorySpace.SMEM),
            # X tile: (2, bn), batch on lanes.
            pl.BlockSpec((k, bn), lambda i: (0, i)),
        ],
        out_specs=pl.BlockSpec((1, bn), lambda i: (0, i)),
        compiler_params=pltpu.CompilerParams(
            # Batch tiles are independent -> shardable across v7x TensorCores.
            dimension_semantics=("parallel",),
        ),
    )(w_flat, xt)

    # (1, n) -> (n, 1): same memory order, free reshape outside the kernel.
    return out.reshape(n, 1)


if __name__ == "__main__":
    key = jax.random.PRNGKey(0)

    # Small case, consistent with the module (W is (2, 1) => 2 feature cols).
    batch = 8
    x = jax.random.normal(key, (batch, 2), dtype=jnp.float32)
    w = jnp.ones((2, 1), dtype=jnp.float32)  # torch.ones(2, 1) init

    out = jax.block_until_ready(lr_forward(x, w))
    ref = x @ w
    assert out.shape == (batch, 1)
    assert jnp.allclose(out, ref, atol=1e-5, rtol=1e-5)

    # Larger, 128-aligned batch exercises the tiled, lane-dense "parallel" path.
    batch2 = 2048
    x2 = jax.random.normal(jax.random.PRNGKey(0), (batch2, 2), dtype=jnp.float32)
    out2 = jax.block_until_ready(lr_forward(x2, w))
    ref2 = x2 @ w
    assert out2.shape == (batch2, 1)
    assert jnp.allclose(out2, ref2, atol=1e-5, rtol=1e-5)

    print("KERNEL_OK")
</pallas_src>

<mosaic_0001>
module attributes {stable_mosaic.version = 11 : i64} {
  func.func @_lr_kernel(%arg0: i32, %arg1: memref<2xf32, #tpu.memory_space<smem>>, %arg2: memref<2x8xf32, #tpu.memory_space<vmem>>, %arg3: memref<1x8xf32, #tpu.memory_space<vmem>>) attributes {dimension_semantics = [#tpu.dimension_semantics<parallel>], iteration_bounds = array<i64: 1>, scalar_prefetch = 0 : i64, scratch_operands = 0 : i64, tpu.core_type = #tpu.core_type<tc>, window_params = [{transform_indices = @transform_0, window_bounds = array<i64: 2>}, {transform_indices = @transform_1, window_bounds = array<i64: 2, 8>}, {transform_indices = @transform_2, window_bounds = array<i64: 1, 8>}]} {
    %c0 = arith.constant 0 : index
    %0 = memref.load %arg1[%c0] : memref<2xf32, #tpu.memory_space<smem>>
    %c1 = arith.constant 1 : index
    %1 = memref.load %arg1[%c1] : memref<2xf32, #tpu.memory_space<smem>>
    %c0_0 = arith.constant 0 : index
    %c0_1 = arith.constant 0 : index
    %2 = vector.load %arg2[%c0_0, %c0_1] : memref<2x8xf32, #tpu.memory_space<vmem>>, vector<1x8xf32>
    %3 = vector.broadcast %0 : f32 to vector<1x8xf32>
    %4 = arith.mulf %3, %2 : vector<1x8xf32>
    %c1_2 = arith.constant 1 : index
    %c0_3 = arith.constant 0 : index
    %5 = vector.load %arg2[%c1_2, %c0_3] : memref<2x8xf32, #tpu.memory_space<vmem>>, vector<1x8xf32>
    %6 = vector.broadcast %1 : f32 to vector<1x8xf32>
    %7 = arith.mulf %6, %5 : vector<1x8xf32>
    %8 = arith.addf %4, %7 : vector<1x8xf32>
    %c0_4 = arith.constant 0 : index
    %c0_5 = arith.constant 0 : index
    %9 = vector.load %arg3[%c0_4, %c0_5] : memref<1x8xf32, #tpu.memory_space<vmem>>, vector<1x8xf32>
    tpu.vector_store %arg3[%c0_4, %c0_5], %8 {strides = array<i32>} : memref<1x8xf32, #tpu.memory_space<vmem>>, vector<1x8xf32>,
    return
  }
  func.func @transform_0(%arg0: i32) -> i32 {
    %c0_i32 = arith.constant 0 : i32
    %c0_i32_0 = arith.constant 0 : i32
    return %c0_i32 : i32
  }
  func.func @transform_1(%arg0: i32) -> (i32, i32) {
    %c0_i32 = arith.constant 0 : i32
    %c0_i32_0 = arith.constant 0 : i32
    return %c0_i32, %arg0 : i32, i32
  }
  func.func @transform_2(%arg0: i32) -> (i32, i32) {
    %c0_i32 = arith.constant 0 : i32
    %c0_i32_0 = arith.constant 0 : i32
    return %c0_i32, %arg0 : i32, i32
  }
}

</mosaic_0001>

<bundles_post_ra>
// kernel: tpu_custom_call.1
= control target key start
LH: loop header
LB: loop body
LE: loop exit
PB: predicated region body
PF: predicated region fallthrough
CT: control target
= control target key end

     0   :  { %7 = vsyncpa [#allocation4], 0  ;;  %s135_s0 = inlined_call_operand.hbm [shape: f32[2], index: 0, kind: input, shape index: {}]   ;;  %s136_s1 = inlined_call_operand.vmem [shape: f32[2,8], index: 1, kind: input, shape index: {}]   ;;  %s137_s2 = inlined_call_operand.hbm [shape: f32[1,8], index: 2, kind: output, shape index: {}]  }
   0x1   :  { %8 = vsyncpa [#allocation3], 0  ;;  %s52_s11 = scalar_lea.hbm %s135_s0, 16 }
   0x2   :  { %p53_p0 = scmp.ne.s32.totalorder %s135_s0, %s52_s11  ;;  %p56_p1 = scmp.lt.u32.totalorder %s52_s11, %s135_s0 }
   0x4   :  { %p58_p2 = pnand %p56_p1, %p53_p0 }
   0x6   :  { %61 = shalt.err (!%p58_p2)
}
   0x7   :  { %s88_s16 = smov [#allocation2]  }
   0x8   :  { %16 = dma.hbm_to_smem %s135_s0, 16, %s88_s16, [#allocation4]  }
   0x9   :  { %84 = dma.done.wait [#allocation4], 16  }
   0xa   :  { %85 = vsyncadd [#allocation4], 4294967280 }
   0xb   :  { %22 = sfence }
   0xc   :  { %s23_s19 = sld [smem:[#allocation2]]  ;;  %s49_s20 = sld [smem:[#allocation2 + $0x1]]  ;;  %v25_v0 = vld [vmem:[%s136_s1] sm:$0x1]  ;;  %v28_v1 = vld [vmem:[%s136_s1 + $0x1] sm:$0x1] }
   0xd   :  { %s89_s25 = smov [#allocation5]   ;;  %vm32_vm0 = vcmask 57344  }
   0xe   :  { %s40_s26 = sshll.u32 %s89_s25, 4  ;;  %s41_s26 = int_to_ptr.vmem [resolvable:$true] %s40_s26 }
   0xf   :  { %s62_s0 = scalar_lea.vmem %s41_s26, 16  ;;  %s66_s27 = scalar_lea.vmem %s41_s26, 32 }
  0x10   :  { %p63_p3 = scmp.ne.s32.totalorder %s41_s26, %s62_s0  ;;  %p67_p4 = scmp.lt.s32.totalorder %s41_s26, %s41_s26 }
  0x11   :  { %p68_p5 = scmp.lt.s32.totalorder %s66_s27, %s62_s0 }
  0x12   :  { %v26_v2 = vstv %s23_s19  ;;  %v29_v3 = vstv %s49_s20 }
  0x13   :  { %v27_v4 = vmul.f32 %v26_v2, %v25_v0  ;;  %v30_v5 = vmul.f32 %v29_v3, %v28_v1  ;;  %p69_p6 = por %p68_p5, %p67_p4 }
  0x15   :  { %v31_v6 = vadd.f32 %v30_v5, %v27_v4  ;;  %p70_p7 = pnand %p69_p6, %p63_p3 }
  0x17   :  { %33 = vst.msk [vmem:[#allocation5] sm:$0x1] %vm32_vm0, %v31_v6 }
  0x18   :  { %73 = shalt.err (!%p70_p7)
}
  0x19   :  { %s74_s29 = scalar_lea.hbm %s137_s2, 16 }
  0x1a   :  { %p75_p8 = scmp.ne.s32.totalorder %s137_s2, %s74_s29  ;;  %p78_p9 = scmp.lt.u32.totalorder %s74_s29, %s137_s2 }
  0x1c   :  { %p80_p10 = pnand %p78_p9, %p75_p8 }
  0x1e   :  { %83 = shalt.err (!%p80_p10)
}
  0x1f   :  { %43 = dma.vmem_to_hbm [thread:$0]  %s41_s26, 16, %s137_s2, [#allocation3]  }
  0x20   :  { %86 = dma.done.wait [#allocation3], 16  }
  0x21   :  { %87 = vsyncadd [#allocation3], 4294967280 }
  0x22   :  { %47 = vsyncpa [#allocation3], 1 }
  0x23   :  { %48 = vsyncpa [#allocation4], 1 }

</bundles_post_ra>
